<compile_context>
chip_gen: v7x
topology: tpu7x:2x2x1
jax: 0.10.0
libtpu: 0.0.40
codegen_flags: <defaults>
</compile_context>

<pallas_src>
import math

import jax
import jax.numpy as jnp
from jax.experimental import pallas as pl
from jax.experimental.pallas import tpu as pltpu


def gcn_kernel(x_ref, w_ref, adj_ref, b_ref, out_ref, support_ref, acc_ref):
    i = pl.program_id(0)          # output row-tile of A
    k = pl.program_id(1)          # reduction over A columns / support rows
    nk = pl.num_programs(1)
    tile_k = x_ref.shape[0]

    # Compute this k-tile of support = X @ W exactly once (first row-tile pass)
    # and keep it resident in VMEM scratch (bf16 feeds the MXU on the 2nd dot).
    @pl.when(i == 0)
    def _():
        s = jnp.dot(x_ref[...], w_ref[...], preferred_element_type=jnp.float32)
        row0 = pl.multiple_of(k * tile_k, tile_k)
        support_ref[pl.ds(row0, tile_k), :] = s.astype(support_ref.dtype)

    # Zero the per-row-tile accumulator at the start of the reduction.
    @pl.when(k == 0)
    def _():
        acc_ref[...] = jnp.zeros_like(acc_ref)

    row0 = pl.multiple_of(k * tile_k, tile_k)
    s_k = support_ref[pl.ds(row0, tile_k), :]
    acc_ref[...] += jnp.dot(adj_ref[...], s_k, preferred_element_type=jnp.float32)

    # Finalize: bias add only once per output tile, lane-dense store.
    @pl.when(k == nk - 1)
    def _():
        out_ref[...] = (acc_ref[...] + b_ref[...]).astype(out_ref.dtype)


def graph_convolution(x, weight, adj, bias=None, *, tile_n=256, tile_k=256,
                      vmem_limit_bytes=32 * 1024 * 1024):
    """Pallas GCN layer: adj @ (x @ weight) + bias.

    x      : [N, F_in]  float32
    weight : [F_in, F_out] float32
    adj    : [N, N]     float32 (dense adjacency, as torch.spmm sees it densely)
    bias   : [F_out]    float32 or None
    """
    n, f_in = x.shape
    f_out = weight.shape[1]
    assert adj.shape == (n, n)

    lane = 128
    f_pad = pl.cdiv(f_out, lane) * lane        # lane-dense output width
    n_r = pl.cdiv(n, tile_n) * tile_n          # padded rows of A / output
    n_c = pl.cdiv(n, tile_k) * tile_k          # padded cols of A / rows of X

    if bias is None:
        bias = jnp.zeros((f_out,), jnp.float32)

    # bf16 inputs (halve adjacency HBM traffic), f32 accumulation on the MXU.
    # Zero-padding is exact: padded A cols/rows and padded W cols contribute 0.
    x_p = jnp.zeros((n_c, f_in), jnp.bfloat16).at[:n, :].set(x.astype(jnp.bfloat16))
    w_p = jnp.zeros((f_in, f_pad), jnp.bfloat16).at[:, :f_out].set(
        weight.astype(jnp.bfloat16))
    a_p = jnp.zeros((n_r, n_c), jnp.bfloat16).at[:n, :n].set(adj.astype(jnp.bfloat16))
    b_p = jnp.zeros((1, f_pad), jnp.float32).at[0, :f_out].set(
        bias.astype(jnp.float32))

    grid = (n_r // tile_n, n_c // tile_k)

    out_padded = pl.pallas_call(
        gcn_kernel,
        out_shape=jax.ShapeDtypeStruct((n_r, f_pad), jnp.float32),
        grid_spec=pltpu.PrefetchScalarGridSpec(
            num_scalar_prefetch=0,
            grid=grid,
            in_specs=[
                # X streamed one k-tile per step (small vs. the A tile; keeps
                # VMEM bounded instead of holding full X resident).
                pl.BlockSpec((tile_k, f_in), lambda i, k: (k, 0)),
                pl.BlockSpec((f_in, f_pad), lambda i, k: (0, 0)),      # W resident
                pl.BlockSpec((tile_n, tile_k), lambda i, k: (i, k)),   # A tile
                pl.BlockSpec((1, f_pad), lambda i, k: (0, 0)),         # bias resident
            ],
            out_specs=pl.BlockSpec((tile_n, f_pad), lambda i, k: (i, 0)),
            scratch_shapes=[
                pltpu.VMEM((n_c, f_pad), jnp.bfloat16),    # persistent support=X@W
                pltpu.VMEM((tile_n, f_pad), jnp.float32),  # row-tile accumulator
            ],
        ),
        compiler_params=pltpu.CompilerParams(
            # 'i' must iterate sequentially on one core: support is computed
            # only during the first row-tile pass and reused afterwards, so
            # megacore-sharding the i axis would be incorrect.
            dimension_semantics=("arbitrary", "arbitrary"),
            vmem_limit_bytes=vmem_limit_bytes,
        ),
    )(x_p, w_p, a_p, b_p)

    return out_padded[:n, :f_out]


if __name__ == "__main__":
    # Small, deterministic problem: 512 nodes, 32 -> 16 features (4x4 grid
    # with the default 256-tiles after padding; F_out padded 16 -> 128).
    N, F_IN, F_OUT = 512, 32, 16
    key = jax.random.PRNGKey(0)
    kx, ka, kw, kb = jax.random.split(key, 4)

    x = jax.random.normal(kx, (N, F_IN), dtype=jnp.float32)

    # Symmetric, row-normalized dense adjacency (what torch.spmm sees densely).
    a = (jax.random.uniform(ka, (N, N)) < 0.05).astype(jnp.float32)
    adj = a + a.T + jnp.eye(N, dtype=jnp.float32)
    deg = jnp.clip(adj.sum(axis=1, keepdims=True), 1.0, None)
    adj = adj / deg

    # Parameter init matching reset_parameters: U(-stdv, stdv), stdv = 1/sqrt(F_OUT).
    stdv = 1.0 / math.sqrt(F_OUT)
    weight = jax.random.uniform(kw, (F_IN, F_OUT), minval=-stdv, maxval=stdv,
                                dtype=jnp.float32)
    bias = jax.random.uniform(kb, (F_OUT,), minval=-stdv, maxval=stdv,
                              dtype=jnp.float32)

    out = graph_convolution(x, weight, adj, bias)
    out = jax.block_until_ready(out)

    # Reference with the same bf16-cast inputs the kernel consumes (f32 math).
    xb = x.astype(jnp.bfloat16).astype(jnp.float32)
    wb = weight.astype(jnp.bfloat16).astype(jnp.float32)
    ab = adj.astype(jnp.bfloat16).astype(jnp.float32)
    ref = ab @ (xb @ wb) + bias[None, :]

    assert out.shape == (N, F_OUT)
    assert jnp.allclose(out, ref, atol=5e-3, rtol=5e-3), "mismatch vs reference"

    print("KERNEL_OK")
</pallas_src>

<mosaic_0001>
module attributes {stable_mosaic.version = 11 : i64} {
  func.func @gcn_kernel(%arg0: i32, %arg1: i32, %arg2: memref<256x32xbf16, #tpu.memory_space<vmem>>, %arg3: memref<32x128xbf16, #tpu.memory_space<vmem>>, %arg4: memref<256x256xbf16, #tpu.memory_space<vmem>>, %arg5: memref<1x128xf32, #tpu.memory_space<vmem>>, %arg6: memref<256x128xf32, #tpu.memory_space<vmem>>, %arg7: memref<512x128xbf16, #tpu.memory_space<vmem>>, %arg8: memref<256x128xf32, #tpu.memory_space<vmem>>) attributes {dimension_semantics = [#tpu.dimension_semantics<arbitrary>, #tpu.dimension_semantics<arbitrary>], iteration_bounds = array<i64: 2, 2>, scalar_prefetch = 0 : i64, scratch_operands = 2 : i64, tpu.core_type = #tpu.core_type<tc>, window_params = [{transform_indices = @transform_0, window_bounds = array<i64: 256, 32>}, {pipeline_mode = #tpu.pipeline_mode<synchronous>, transform_indices = @transform_1, window_bounds = array<i64: 32, 128>}, {transform_indices = @transform_2, window_bounds = array<i64: 256, 256>}, {pipeline_mode = #tpu.pipeline_mode<synchronous>, transform_indices = @transform_3, window_bounds = array<i64: 1, 128>}, {transform_indices = @transform_4, window_bounds = array<i64: 256, 128>}]} {
    %c0_i32 = arith.constant 0 : i32
    %0 = arith.cmpi eq, %arg0, %c0_i32 : i32
    %1 = arith.extui %0 : i1 to i32
    %c0_i32_0 = arith.constant 0 : i32
    %2 = arith.cmpi ne, %1, %c0_i32_0 : i32
    scf.if %2 {
      %c0_10 = arith.constant 0 : index
      %c0_11 = arith.constant 0 : index
      %18 = vector.load %arg2[%c0_10, %c0_11] : memref<256x32xbf16, #tpu.memory_space<vmem>>, vector<256x32xbf16>
      %c0_12 = arith.constant 0 : index
      %c0_13 = arith.constant 0 : index
      %19 = vector.load %arg3[%c0_12, %c0_13] : memref<32x128xbf16, #tpu.memory_space<vmem>>, vector<32x128xbf16>
      %cst_14 = arith.constant dense<0.000000e+00> : vector<256x128xf32>
      %20 = tpu.matmul %18, %19, %cst_14 {dimension_numbers = #tpu.dot_dimension_numbers<[1], [0], [0], [1], [0, 0, 1, 1], [], []>} : vector<256x32xbf16>, vector<32x128xbf16>, vector<256x128xf32> -> vector<256x128xf32>
      %c256_i32_15 = arith.constant 256 : i32
      %21 = arith.muli %arg1, %c256_i32_15 : i32
      %22 = tpu.assume_multiple %21, 256 : i32
      %23 = arith.truncf %20 : vector<256x128xf32> to vector<256x128xbf16>
      %24 = arith.index_cast %22 : i32 to index
      %c0_16 = arith.constant 0 : index
      %25 = vector.load %arg7[%24, %c0_16] : memref<512x128xbf16, #tpu.memory_space<vmem>>, vector<256x128xbf16>
      tpu.vector_store %arg7[%24, %c0_16], %23 {strides = array<i32>} : memref<512x128xbf16, #tpu.memory_space<vmem>>, vector<256x128xbf16>,
    } else {
    }
    %c0_i32_1 = arith.constant 0 : i32
    %3 = arith.cmpi eq, %arg1, %c0_i32_1 : i32
    %4 = arith.extui %3 : i1 to i32
    %c0_i32_2 = arith.constant 0 : i32
    %5 = arith.cmpi ne, %4, %c0_i32_2 : i32
    scf.if %5 {
      %cst_10 = arith.constant 0.000000e+00 : f32
      %18 = vector.broadcast %cst_10 : f32 to vector<256x128xf32>
      %c0_11 = arith.constant 0 : index
      %c0_12 = arith.constant 0 : index
      %19 = vector.load %arg8[%c0_11, %c0_12] : memref<256x128xf32, #tpu.memory_space<vmem>>, vector<256x128xf32>
      tpu.vector_store %arg8[%c0_11, %c0_12], %18 {strides = array<i32>} : memref<256x128xf32, #tpu.memory_space<vmem>>, vector<256x128xf32>,
    } else {
    }
    %c256_i32 = arith.constant 256 : i32
    %6 = arith.muli %arg1, %c256_i32 : i32
    %7 = tpu.assume_multiple %6, 256 : i32
    %8 = arith.index_cast %7 : i32 to index
    %c0 = arith.constant 0 : index
    %9 = vector.load %arg7[%8, %c0] : memref<512x128xbf16, #tpu.memory_space<vmem>>, vector<256x128xbf16>
    %c0_3 = arith.constant 0 : index
    %c0_4 = arith.constant 0 : index
    %10 = vector.load %arg8[%c0_3, %c0_4] : memref<256x128xf32, #tpu.memory_space<vmem>>, vector<256x128xf32>
    %c0_5 = arith.constant 0 : index
    %c0_6 = arith.constant 0 : index
    %11 = vector.load %arg4[%c0_5, %c0_6] : memref<256x256xbf16, #tpu.memory_space<vmem>>, vector<256x256xbf16>
    %cst = arith.constant dense<0.000000e+00> : vector<256x128xf32>
    %12 = tpu.matmul %11, %9, %cst {dimension_numbers = #tpu.dot_dimension_numbers<[1], [0], [0], [1], [0, 0, 1, 1], [], []>} : vector<256x256xbf16>, vector<256x128xbf16>, vector<256x128xf32> -> vector<256x128xf32>
    %13 = arith.addf %10, %12 : vector<256x128xf32>
    %c0_7 = arith.constant 0 : index
    %c0_8 = arith.constant 0 : index
    %14 = vector.load %arg8[%c0_7, %c0_8] : memref<256x128xf32, #tpu.memory_space<vmem>>, vector<256x128xf32>
    tpu.vector_store %arg8[%c0_7, %c0_8], %13 {strides = array<i32>} : memref<256x128xf32, #tpu.memory_space<vmem>>, vector<256x128xf32>,
    %c1_i32 = arith.constant 1 : i32
    %15 = arith.cmpi eq, %arg1, %c1_i32 : i32
    %16 = arith.extui %15 : i1 to i32
    %c0_i32_9 = arith.constant 0 : i32
    %17 = arith.cmpi ne, %16, %c0_i32_9 : i32
    scf.if %17 {
      %c0_10 = arith.constant 0 : index
      %c0_11 = arith.constant 0 : index
      %18 = vector.load %arg8[%c0_10, %c0_11] : memref<256x128xf32, #tpu.memory_space<vmem>>, vector<256x128xf32>
      %c0_12 = arith.constant 0 : index
      %c0_13 = arith.constant 0 : index
      %19 = vector.load %arg5[%c0_12, %c0_13] : memref<1x128xf32, #tpu.memory_space<vmem>>, vector<1x128xf32>
      %20 = vector.broadcast %19 : vector<1x128xf32> to vector<256x128xf32>
      %21 = arith.addf %18, %20 : vector<256x128xf32>
      %c0_14 = arith.constant 0 : index
      %c0_15 = arith.constant 0 : index
      %22 = vector.load %arg6[%c0_14, %c0_15] : memref<256x128xf32, #tpu.memory_space<vmem>>, vector<256x128xf32>
      tpu.vector_store %arg6[%c0_14, %c0_15], %21 {strides = array<i32>} : memref<256x128xf32, #tpu.memory_space<vmem>>, vector<256x128xf32>,
    } else {
    }
    return
  }
  func.func @transform_0(%arg0: i32, %arg1: i32) -> (i32, i32) {
    %c0_i32 = arith.constant 0 : i32
    %c0_i32_0 = arith.constant 0 : i32
    return %arg1, %c0_i32 : i32, i32
  }
  func.func @transform_1(%arg0: i32, %arg1: i32) -> (i32, i32) {
    %c0_i32 = arith.constant 0 : i32
    %c0_i32_0 = arith.constant 0 : i32
    %c0_i32_1 = arith.constant 0 : i32
    return %c0_i32, %c0_i32_0 : i32, i32
  }
  func.func @transform_2(%arg0: i32, %arg1: i32) -> (i32, i32) {
    %c0_i32 = arith.constant 0 : i32
    return %arg0, %arg1 : i32, i32
  }
  func.func @transform_3(%arg0: i32, %arg1: i32) -> (i32, i32) {
    %c0_i32 = arith.constant 0 : i32
    %c0_i32_0 = arith.constant 0 : i32
    %c0_i32_1 = arith.constant 0 : i32
    return %c0_i32, %c0_i32_0 : i32, i32
  }
  func.func @transform_4(%arg0: i32, %arg1: i32) -> (i32, i32) {
    %c0_i32 = arith.constant 0 : i32
    %c0_i32_0 = arith.constant 0 : i32
    return %arg0, %c0_i32 : i32, i32
  }
}

</mosaic_0001>

<bundles_post_ra>
// kernel: tpu_custom_call.1
= control target key start
LH: loop header
LB: loop body
LE: loop exit
PB: predicated region body
PF: predicated region fallthrough
CT: control target
= control target key end

     0   :  { %9 = vsyncpa [#allocation5], 0  ;;  %s2427_s0 = inlined_call_operand.vmem [shape: bf16[512,32], index: 0, kind: input, shape index: {}]   ;;  %s2428_s1 = inlined_call_operand.vmem [shape: bf16[32,128], index: 1, kind: input, shape index: {}]   ;;  %s2429_s2 = inlined_call_operand.hbm [shape: bf16[512,512], index: 2, kind: input, shape index: {}]   ;;  %s2430_s3 = inlined_call_operand.vmem [shape: f32[1,128], index: 3, kind: input, shape index: {}]   ;;  %s2431_s4 = inlined_call_operand.hbm [shape: f32[512,128], index: 4, kind: output, shape index: {}]  }
   0x1   :  { %11 = vsyncpa [#allocation5 + $0x1], 0 }
   0x2   :  { %12 = vsyncpa [#allocation6], 0 }
   0x3   :  { %14 = vsyncpa [#allocation6 + $0x1], 0  ;;  %s2010_s15 = smov 0   ;;  %s2012_s16 = smov 0  }
   0x4   :  { %s2014_s17 = smov 0   ;;  %s2016_s18 = smov 0  }
   0x5   :  { %s2018_s19 = smov 0   ;;  %s2020_s20 = smov 0  }
   0x6   :  { %s2022_s21 = smov 0   ;;  %s2024_s22 = smov 0  }
   0x7   :  { %s2026_s23 = smov 0   ;;  %s2028_s24 = smov 0  }
   0x8   :  { %s2030_s25 = smov 0  }
   0x9 LB: > { %2436 = sst [smem:[#allocation10_spill]] %s1955_s20  ;;  %s1368_s26 = sadd.s32 4294967295, %s1975_s25   ;;  %s1975_s25 = sphi %s2030_s25, %s20_s25   ;;  %s1971_s24 = sphi %s2028_s24, %s2460_s24   ;;  %s1967_s23 = sphi %s2026_s23, %s2459_s23   ;;  %s1963_s22 = sphi %s2024_s22, %s2458_s22   ;;  %s1959_s21 = sphi %s2022_s21, %s2457_s21   ;;  %s1955_s20 = sphi %s2020_s20, %s2449_s20   ;;  %s1951_s19 = sphi %s2018_s19, %s2456_s19   ;;  %s1947_s18 = sphi %s2016_s18, %s2455_s18   ;;  %s1943_s17 = sphi %s2014_s17, %s2454_s17   ;;  %s1939_s16 = sphi %s2012_s16, %s2453_s16   ;;  %s1935_s15 = sphi %s2010_s15, %s2452_s15  }
   0xa   : > { %s1369_s27 = sadd.s32 4294967294, %s1975_s25   ;;  %s29_s28 = sadd.s32 1, %s1967_s23 }
   0xb   : > { %s32_s29 = sadd.s32 1, %s1971_s24  ;;  %p30_p0 = scmp.ge.s32.totalorder %s29_s28, 2 }
   0xc   : > { %s88_s30 = sadd.s32 1, %s1955_s20  ;;  %p95_p1 = scmp.ne.s32.totalorder %s1955_s20, %s1951_s19 }
   0xd   : > { %p96_p2 = scmp.eq.s32.totalorder %s1975_s25, 0  ;;  %s2462_s28 = smov (%p30_p0, %s29_s28), 0 }
   0xe   : > { %2437 = sst [smem:[#allocation11_spill]] %s2462_s28  ;;  %s2464_s29 = smov (!%p30_p0, %s32_s29), %s1971_s24 }
   0xf   : > { %s84_s5 = ssub.s32 %s1967_s23, %s2462_s28  ;;  %p2076_p3 = por %p96_p2, %p95_p1 }
  0x10   : > { %p34_p4 = scmp.ge.s32.totalorder %s2464_s29, 2  ;;  %p101_p5 = scmp.ne.s32.totalorder %s1951_s19, %s1947_s18 }
  0x11   : > { %p102_p6 = scmp.eq.s32.totalorder %s1368_s26, 0  ;;  %s135_s7 = sadd.s32 1, %s1943_s17 }
  0x12   : > { %s2466_s29 = smov (%p34_p4, %s2464_s29), 0  ;;  %p145_p8 = scmp.ne.s32.totalorder %s1943_s17, %s1939_s16 }
  0x13   : > { %2439 = sst [smem:[#allocation12_spill]] %s2466_s29  ;;  %p2084_p7 = por %p102_p6, %p101_p5 }
  0x14   : > { %s83_s9 = ssub.s32 %s1971_s24, %s2466_s29  ;;  %p146_p9 = scmp.eq.s32.totalorder %s1368_s26, 3 }
  0x15   : > { %s85_s10 = sor.u32 %s84_s5, %s83_s9  ;;  %p133_p10 = scmp.eq.s32.totalorder %s83_s9, 0 }
  0x16   : > { %p86_p11 = scmp.eq.s32.totalorder %s85_s10, 0  ;;  %p2092_p12 = por %p146_p9, %p145_p8 }
  0x17   : > { %s2097_s12 = scalar_select %p133_p10, %s1943_s17, %s135_s7  }
  0x18   : > { %s2441_s11 = scalar_select %p2092_p12, 1, 0 }
  0x19   : > { %s2100_s13 = scalar_select %p86_p11, %s1955_s20, %s88_s30  }
  0x1a   : > { %p151_p13 = scmp.ne.s32.totalorder %s1939_s16, %s1935_s15  ;;  %p152_p0 = scmp.eq.s32.totalorder %s1369_s27, 3 }
  0x1b   : > { %2442 = sst [smem:[#allocation13_spill]] %s2100_s13  ;;  %p1661_p1 = scmp.lt.s32.totalorder %s1975_s25, 4 }
  0x1c   : > { %p2105_p2 = por %p152_p0, %p151_p13  ;;  %s187_s18 = sand.u32 1, %s1955_s20  }
  0x1d   : > { %s1372_s26 = sshll.u32 %s187_s18, 8  ;;  %s1374_s5 = sshll.u32 %s1967_s23, 1 }
  0x1e   : > { %s2443_s14 = scalar_select %p2105_p2, 1, 0 }
  0x1f   : > { %s1461_s9 = sshll.u32 %s1971_s24, 7  ;;  %s191_s10 = scalar_lea.vmem [#allocation4], %s1372_s26 }
  0x20   : > { %s201_s29 = sshll.u32 %s191_s10, 4  ;;  %s198_s28 = sadd.s32 %s1461_s9, %s1374_s5  ;;  %s2112_s29 = int_to_ptr.vmem [resolvable:$true] %s201_s29 }
  0x21   : > { %s1376_s7 = sshll.u32 %s198_s28, 6  ;;  %p2116_p4 = pnand %p1661_p1, %p2076_p3 }
  0x22   : > { %s2123_s20 = scalar_lea.hbm %s2429_s2, %s1376_s7  ;;  %s2126_s26 = scalar_lea.sflag [#allocation5], %s187_s18 }
  0x23   : > { %s1823_s28 = scalar_lea.hbm %s2123_s20, 4096  ;;  %p1825_p3 = pneg %p2116_p4 }
  0x24   : > { %p1824_p6 = scmp.ne.s32.totalorder %s2123_s20, %s1823_s28  ;;  %s1828_s5 = scalar_lea.hbm %s2429_s2, 16384 }
  0x25   : > { %p1829_p10 = scmp.lt.u32.totalorder %s2123_s20, %s2429_s2  ;;  %p1830_p11 = scmp.lt.u32.totalorder %s1828_s5, %s1823_s28 }
  0x26   : > { %p1826_p8 = pnand %p1825_p3, %p1824_p6  ;;  %p1832_p0 = scmp.lt.u32.totalorder %s1823_s28, %s2123_s20 }
  0x27   : > { %p1831_p13 = por %p1830_p11, %p1829_p10 }
  0x28   : > { %p1827_p9 = pneg %p1826_p8 }
  0x29   : > { %p1833_p1 = por %p1832_p0, %p1831_p13 }
  0x2b   : > { %p1834_p5 = pnand %p1833_p1, %p1827_p9 }
  0x2d   : > { %1837 = shalt.err (!%p1834_p5)
}
  0x2e   : > { %s1838_s18 = scalar_lea.vmem %s2112_s29, 4096  ;;  %s1977_s7 = smov [#allocation4]  }
  0x2f   : > { %p1839_p6 = scmp.ne.s32.totalorder %s2112_s29, %s1838_s18  ;;  %s1843_s27 = sshll.u32 %s1977_s7, 4  ;;  %s1844_s27 = int_to_ptr.vmem [resolvable:$false] %s1843_s27 }
  0x30   : > { %s1845_s6 = scalar_lea.vmem %s1844_s27, 8192  ;;  %p1846_p12 = scmp.lt.s32.totalorder %s2112_s29, %s1844_s27 }
  0x31   : > { %p1841_p8 = pnand %p1839_p6, %p1825_p3  ;;  %p1847_p10 = scmp.lt.s32.totalorder %s1845_s6, %s1838_s18 }
  0x33   : > { %p1842_p2 = pneg %p1841_p8  ;;  %p1848_p11 = por %p1847_p10, %p1846_p12 }
  0x35   : > { %p1849_p13 = pnand %p1848_p11, %p1842_p2 }
  0x37   : > { %1852 = shalt.err (!%p1849_p13)
}
  0x38   : > { %s1978_s28 = smov 256   ;;  %s1979_s13 = smov 128  }
  0x39   : > { %s1980_s5 = smov 8   ;;  %p209_p5 = scmp.lt.s32.totalorder %s1975_s25, 5 }
  0x3a   : > { %1656 = dma.hbm_to_vmem [thread:$0]  (!%p2116_p4), %s2123_s20, 4096, %s2112_s29, %s2126_s26, %s1978_s28, %s1979_s13, %s1980_s5  }
  0x3b   : > { %p2445_p3 = scmp.ge.s32.totalorder %s1975_s25, 1 }
  0x3d   : > { %p210_p9 = pnand %p2445_p3, %p209_p5 }
  0x3e   : > { %s215_s9 = sand.u32 (!%p210_p9), 1, %s1951_s19  }
  0x3f   : > { %213 = sbr.rel (%p210_p9) target bundleno = 693 (0x2b5), region = 36  ;;  %s1378_s10 = sshll.u32 (!%p210_p9), %s215_s9, 8 }
  0x40   : > { %s216_s18 = scalar_lea.sflag (!%p210_p9), [#allocation5], %s215_s9  ;;  %s2158_s7 = scalar_lea.vmem (!%p210_p9), [#allocation4], %s1378_s10 }
  0x46   : > { %1926 = dma.done.wait (%p2084_p7), %s216_s18, 4096  }
  0x47   : > { %1928 = vsyncadd (%p2084_p7), %s216_s18, 4294963200  ;;  %s246_s20 = sand.u32 1, %s1939_s16   ;;  %s1380_s29 = sshll.u32 %s1959_s21, 5 }
  0x48   : > { %s1379_s30 = sshll.u32 %s246_s20, 8  ;;  %p250_p12 = scmp.lt.s32.totalorder %s1380_s29, 63 }
  0x49   : > { %s2173_s13 = scalar_lea.vmem [#allocation7], %s1379_s30  ;;  %p1382_p2 = scmp.ne.s32.totalorder %s1963_s22, 0 }
  0x4a   : > { %s2468_s29 = smov (!%p250_p12, %s1380_s29), 63  ;;  %v1757_v0 = vld [vmem:[%s2428_s1] sm:$0xff] (!%p1382_p2)   ;;  %v1758_v1 = vld [vmem:[%s2428_s1 + $0x8] sm:$0xff] (!%p1382_p2)   ;;  %vm391_vm0 = vcmask (!%p1382_p2), 261120   ;;  %s1417_s18 = sshll.u32 (!%p1382_p2), %s1959_s21, 8 }
  0x4b   : > { %s1381_s26 = sshll.u32 %s2468_s29, 2  ;;  %262 = sbr.rel (%p1382_p2) target bundleno = 325 (0x145), region = 44  ;;  %1593 = vmatprep.subr.bf16.mxu0 (!%p1382_p2), %v1757_v0  ;;  %1629 = vmatprep.subr.bf16.mxu1 (!%p1382_p2), %v1757_v0 }
  0x4c   : > { %s2171_s28 = scalar_lea.vmem %s2427_s0, %s1381_s26  ;;  %1594 = vmatpush3.bf16.msra.mxu0 (!%p1382_p2), %v1757_v0  ;;  %1631 = vmatpush3.bf16.msra.mxu1 (!%p1382_p2), %v1757_v0  ;;  %s618_s29 = sshra.s32 (!%p1382_p2), %s1417_s18, 4 }
  0x4d   : > { %v1759_v2 = vld [vmem:[%s2171_s28] sm:$0xff] (!%p1382_p2)   ;;  %1595 = vmatprep.subr.bf16.mxu0 (!%p1382_p2), %v1758_v1  ;;  %1630 = vmatprep.subr.bf16.mxu1 (!%p1382_p2), %v1758_v1  ;;  %v1761_v4 = vld [vmem:[%s2171_s28 + $0x8] sm:$0xff] (!%p1382_p2)   ;;  %v1763_v6 = vld [vmem:[%s2171_s28 + $0x10] sm:$0xff] (!%p1382_p2)   ;;  %s1418_s30 = sshll.u32 (!%p1382_p2), %s618_s29, 3 }
  0x4e   : > { %v1760_v3 = vld [vmem:[%s2171_s28 + $0x40] sm:$0xff] (!%p1382_p2)   ;;  %1597 = vmatprep.mubr.msk.bf16.mxu0 (!%p1382_p2), %vm391_vm0, %v1759_v2  ;;  %v1762_v5 = vld [vmem:[%s2171_s28 + $0x48] sm:$0xff] (!%p1382_p2)   ;;  %v1764_v7 = vld [vmem:[%s2171_s28 + $0x50] sm:$0xff] (!%p1382_p2)   ;;  %s2215_s26 = scalar_lea.vmem (!%p1382_p2), [#allocation2], %s1418_s30 }
  0x4f   : > { %1613 = vmatprep.mubr.msk.bf16.mxu1 (!%p1382_p2), %vm391_vm0, %v1760_v3  ;;  %v1765_v8 = vld [vmem:[%s2171_s28 + $0x18] sm:$0xff] (!%p1382_p2)   ;;  %v1767_v10 = vld [vmem:[%s2171_s28 + $0x20] sm:$0xff] (!%p1382_p2)   ;;  %v1769_v12 = vld [vmem:[%s2171_s28 + $0x28] sm:$0xff] (!%p1382_p2)  }
  0x50   : > { %1596 = vmatpush3.bf16.msra.mxu0 (!%p1382_p2), %v1758_v1  ;;  %1632 = vmatpush3.bf16.msra.mxu1 (!%p1382_p2), %v1758_v1  ;;  %v1766_v9 = vld [vmem:[%s2171_s28 + $0x58] sm:$0xff] (!%p1382_p2)   ;;  %v1768_v11 = vld [vmem:[%s2171_s28 + $0x60] sm:$0xff] (!%p1382_p2)   ;;  %v1770_v13 = vld [vmem:[%s2171_s28 + $0x68] sm:$0xff] (!%p1382_p2)  }
  0x51   : > { %v1771_v14 = vld [vmem:[%s2171_s28 + $0x30] sm:$0xff] (!%p1382_p2)   ;;  %v1773_v16 = vld [vmem:[%s2171_s28 + $0x38] sm:$0xff] (!%p1382_p2)  }
  0x52   : > { %v1772_v15 = vld [vmem:[%s2171_s28 + $0x70] sm:$0xff]   ;;  %v1774_v17 = vld [vmem:[%s2171_s28 + $0x78] sm:$0xff]  }
  0x53   : > { %1598 = vmatmul.mubr.msk.bf16.vlgmr.msra.gmra.mrb[0].mxu0 %vm391_vm0, %v1761_v4  ;;  %1614 = vmatmul.mubr.msk.bf16.vlgmr.msra.gmra.mrb[0].mxu1 %vm391_vm0, %v1762_v5 }
  0x54   : > { %1601 = vmatprep.mubr.msk.bf16.mxu0 %vm391_vm0, %v1763_v6  ;;  %1617 = vmatprep.mubr.msk.bf16.mxu1 %vm391_vm0, %v1764_v7 }
  0x5b   : > { %1602 = vmatmul.mubr.msk.bf16.gmra.mrb[4].mxu0 %vm391_vm0, %v1765_v8  ;;  %1618 = vmatmul.mubr.msk.bf16.gmra.mrb[4].mxu1 %vm391_vm0, %v1766_v9 }
  0x5c   : > { %1605 = vmatprep.mubr.msk.bf16.mxu0 %vm391_vm0, %v1767_v10  ;;  %1621 = vmatprep.mubr.msk.bf16.mxu1 %vm391_vm0, %v1768_v11 }
  0x63   : > { %1606 = vmatmul.mubr.msk.bf16.gmra.mrb[8].mxu0 %vm391_vm0, %v1769_v12  ;;  %1622 = vmatmul.mubr.msk.bf16.gmra.mrb[8].mxu1 %vm391_vm0, %v1770_v13 }
  0x64   : > { %1609 = vmatprep.mubr.msk.bf16.mxu0 %vm391_vm0, %v1771_v14  ;;  %1625 = vmatprep.mubr.msk.bf16.mxu1 %vm391_vm0, %v1772_v15 }
  0x6b   : > { %1610 = vmatmul.mubr.msk.bf16.gmra.mrb[12].mxu0 %vm391_vm0, %v1773_v16  ;;  %1626 = vmatmul.mubr.msk.bf16.gmra.mrb[12].mxu1 %vm391_vm0, %v1774_v17 }
 0x126   : > { %v1599_v18 = vpop.f32.mrb[0].mxu0  ;;  %v1615_v19 = vpop.f32.mrb[0].mxu1 }
 0x127   : > { %v474_v20 = vpop.f32.mrb[1].mxu0  ;;  %v538_v21 = vpop.f32.mrb[1].mxu1 }
 0x128   : > { %v1600_v22 = vpop.f32.mrb[2].mxu0  ;;  %v1616_v23 = vpop.f32.mrb[2].mxu1 }
 0x129   : > { %v603_v24 = vpack.c.bf16 %v1600_v22, %v1599_v18  ;;  %v611_v25 = vpack.c.bf16 %v1616_v23, %v1615_v19  ;;  %v477_v26 = vpop.f32.mrb[3].mxu0  ;;  %v541_v27 = vpop.f32.mrb[3].mxu1 }
 0x12a   : > { %v602_v28 = vpack.c.bf16 %v477_v26, %v474_v20  ;;  %v610_v29 = vpack.c.bf16 %v541_v27, %v538_v21 }
 0x12b   : > { %623 = vst [vmem:[%s2215_s26 + $0x8] sm:$0xff] %v603_v24  ;;  %631 = vst [vmem:[%s2215_s26 + $0x48] sm:$0xff] %v611_v25 }
 0x12c   : > { %622 = vst [vmem:[%s2215_s26] sm:$0xff] %v602_v28  ;;  %630 = vst [vmem:[%s2215_s26 + $0x40] sm:$0xff] %v610_v29 }
 0x12e   : > { %v1603_v30 = vpop.f32.mrb[4].mxu0  ;;  %v1619_v31 = vpop.f32.mrb[4].mxu1 }
 0x12f   : > { %v490_v32 = vpop.f32.mrb[5].mxu0  ;;  %v554_v33 = vpop.f32.mrb[5].mxu1 }
 0x130   : > { %v1604_v34 = vpop.f32.mrb[6].mxu0  ;;  %v1620_v35 = vpop.f32.mrb[6].mxu1 }
 0x131   : > { %v605_v36 = vpack.c.bf16 %v1604_v34, %v1603_v30  ;;  %v613_v37 = vpack.c.bf16 %v1620_v35, %v1619_v31  ;;  %v493_v38 = vpop.f32.mrb[7].mxu0  ;;  %v557_v39 = vpop.f32.mrb[7].mxu1 }
 0x132   : > { %v604_v40 = vpack.c.bf16 %v493_v38, %v490_v32  ;;  %v612_v41 = vpack.c.bf16 %v557_v39, %v554_v33 }
 0x133   : > { %625 = vst [vmem:[%s2215_s26 + $0x18] sm:$0xff] %v605_v36  ;;  %633 = vst [vmem:[%s2215_s26 + $0x58] sm:$0xff] %v613_v37 }
 0x134   : > { %624 = vst [vmem:[%s2215_s26 + $0x10] sm:$0xff] %v604_v40  ;;  %632 = vst [vmem:[%s2215_s26 + $0x50] sm:$0xff] %v612_v41 }
 0x136   : > { %v1607_v42 = vpop.f32.mrb[8].mxu0  ;;  %v1623_v43 = vpop.f32.mrb[8].mxu1 }
 0x137   : > { %v506_v44 = vpop.f32.mrb[9].mxu0  ;;  %v570_v45 = vpop.f32.mrb[9].mxu1 }
 0x138   : > { %v1608_v46 = vpop.f32.mrb[10].mxu0  ;;  %v1624_v47 = vpop.f32.mrb[10].mxu1 }
 0x139   : > { %v607_v48 = vpack.c.bf16 %v1608_v46, %v1607_v42  ;;  %v615_v49 = vpack.c.bf16 %v1624_v47, %v1623_v43  ;;  %v509_v50 = vpop.f32.mrb[11].mxu0  ;;  %v573_v51 = vpop.f32.mrb[11].mxu1 }
 0x13a   : > { %v606_v52 = vpack.c.bf16 %v509_v50, %v506_v44  ;;  %v614_v53 = vpack.c.bf16 %v573_v51, %v570_v45 }
 0x13b   : > { %627 = vst [vmem:[%s2215_s26 + $0x28] sm:$0xff] %v607_v48  ;;  %635 = vst [vmem:[%s2215_s26 + $0x68] sm:$0xff] %v615_v49 }
 0x13c   : > { %626 = vst [vmem:[%s2215_s26 + $0x20] sm:$0xff] %v606_v52  ;;  %634 = vst [vmem:[%s2215_s26 + $0x60] sm:$0xff] %v614_v53 }
 0x13e   : > { %v1611_v54 = vpop.f32.mrb[12].mxu0  ;;  %v1627_v55 = vpop.f32.mrb[12].mxu1 }
 0x13f   : > { %v522_v56 = vpop.f32.mrb[13].mxu0  ;;  %v586_v57 = vpop.f32.mrb[13].mxu1 }
 0x140   : > { %v1612_v58 = vpop.f32.mrb[14].mxu0  ;;  %v1628_v59 = vpop.f32.mrb[14].mxu1 }
 0x141   : > { %v609_v60 = vpack.c.bf16 %v1612_v58, %v1611_v54  ;;  %v617_v61 = vpack.c.bf16 %v1628_v59, %v1627_v55  ;;  %v525_v62 = vpop.f32.mrb[15].mxu0  ;;  %v589_v63 = vpop.f32.mrb[15].mxu1 }
 0x142   : > { %v608_v0 = vpack.c.bf16 %v525_v62, %v522_v56  ;;  %v616_v1 = vpack.c.bf16 %v589_v63, %v586_v57 }
 0x143   : > { %629 = vst [vmem:[%s2215_s26 + $0x38] sm:$0xff] %v609_v60  ;;  %637 = vst [vmem:[%s2215_s26 + $0x78] sm:$0xff] %v617_v61 }
 0x144   : > { %628 = vst [vmem:[%s2215_s26 + $0x30] sm:$0xff] %v608_v0  ;;  %636 = vst [vmem:[%s2215_s26 + $0x70] sm:$0xff] %v616_v1 }
 0x145 PF: > { %p1419_p7 = scmp.ne.s32.totalorder %s1959_s21, 0 }
 0x146   : > { %v1981_v2 = vmov (!%p1419_p7), 0.0  }
 0x147   : > { %641 = sbr.rel (%p1419_p7) target bundleno = 343 (0x157), region = 48  ;;  %642 = vst [vmem:[#allocation3] sm:$0xff] (!%p1419_p7), %v1981_v2  ;;  %643 = vst [vmem:[#allocation3 + $0x8] sm:$0xff] (!%p1419_p7), %v1981_v2 }
 0x148   : > { %644 = vst [vmem:[#allocation3 + $0x10] sm:$0xff] (!%p1419_p7), %v1981_v2  ;;  %645 = vst [vmem:[#allocation3 + $0x18] sm:$0xff] (!%p1419_p7), %v1981_v2 }
 0x149   : > { %646 = vst [vmem:[#allocation3 + $0x20] sm:$0xff] (!%p1419_p7), %v1981_v2  ;;  %647 = vst [vmem:[#allocation3 + $0x28] sm:$0xff] (!%p1419_p7), %v1981_v2 }
 0x14a   : > { %648 = vst [vmem:[#allocation3 + $0x30] sm:$0xff] (!%p1419_p7), %v1981_v2  ;;  %649 = vst [vmem:[#allocation3 + $0x38] sm:$0xff] (!%p1419_p7), %v1981_v2 }
 0x14b   : > { %650 = vst [vmem:[#allocation3 + $0x40] sm:$0xff] (!%p1419_p7), %v1981_v2  ;;  %651 = vst [vmem:[#allocation3 + $0x48] sm:$0xff] (!%p1419_p7), %v1981_v2 }
 0x14c   : > { %652 = vst [vmem:[#allocation3 + $0x50] sm:$0xff] (!%p1419_p7), %v1981_v2  ;;  %653 = vst [vmem:[#allocation3 + $0x58] sm:$0xff] (!%p1419_p7), %v1981_v2 }
 0x14d   : > { %654 = vst [vmem:[#allocation3 + $0x60] sm:$0xff] (!%p1419_p7), %v1981_v2  ;;  %655 = vst [vmem:[#allocation3 + $0x68] sm:$0xff] (!%p1419_p7), %v1981_v2 }
 0x14e   : > { %656 = vst [vmem:[#allocation3 + $0x70] sm:$0xff] %v1981_v2  ;;  %657 = vst [vmem:[#allocation3 + $0x78] sm:$0xff] %v1981_v2 }
 0x14f   : > { %658 = vst [vmem:[#allocation3 + $0x80] sm:$0xff] %v1981_v2  ;;  %659 = vst [vmem:[#allocation3 + $0x88] sm:$0xff] %v1981_v2 }
 0x150   : > { %660 = vst [vmem:[#allocation3 + $0x90] sm:$0xff] %v1981_v2  ;;  %661 = vst [vmem:[#allocation3 + $0x98] sm:$0xff] %v1981_v2 }
 0x151   : > { %662 = vst [vmem:[#allocation3 + $0xa0] sm:$0xff] %v1981_v2  ;;  %663 = vst [vmem:[#allocation3 + $0xa8] sm:$0xff] %v1981_v2 }
 0x152   : > { %664 = vst [vmem:[#allocation3 + $0xb0] sm:$0xff] %v1981_v2  ;;  %665 = vst [vmem:[#allocation3 + $0xb8] sm:$0xff] %v1981_v2 }
 0x153   : > { %666 = vst [vmem:[#allocation3 + $0xc0] sm:$0xff] %v1981_v2  ;;  %667 = vst [vmem:[#allocation3 + $0xc8] sm:$0xff] %v1981_v2 }
 0x154   : > { %668 = vst [vmem:[#allocation3 + $0xd0] sm:$0xff] %v1981_v2  ;;  %669 = vst [vmem:[#allocation3 + $0xd8] sm:$0xff] %v1981_v2 }
 0x155   : > { %670 = vst [vmem:[#allocation3 + $0xe0] sm:$0xff] %v1981_v2  ;;  %671 = vst [vmem:[#allocation3 + $0xe8] sm:$0xff] %v1981_v2 }
 0x156   : > { %672 = vst [vmem:[#allocation3 + $0xf0] sm:$0xff] %v1981_v2  ;;  %673 = vst [vmem:[#allocation3 + $0xf8] sm:$0xff] %v1981_v2 }
 0x157 PF: > { %s1420_s27 = sshll.u32 %s1959_s21, 8  ;;  %v1777_v3 = vld [vmem:[%s2158_s7 + $0x4] ss:$8 sps:$4 sm:$0xff]   ;;  %v1775_v21 = vld [vmem:[%s2158_s7] ss:$8 sps:$4 sm:$0xff]   ;;  %p1454_p4 = scmp.ne.s32.totalorder %s1959_s21, 1 }
 0x158   : > { %s675_s6 = sshra.s32 %s1420_s27, 4  ;;  %v1780_v4 = vld [vmem:[%s2158_s7 + $0x84] ss:$8 sps:$4 sm:$0xff]   ;;  %951 = vmatprep.mubr.bf16.mxu0 %v1777_v3  ;;  %v1778_v22 = vld [vmem:[%s2158_s7 + $0x80] ss:$8 sps:$4 sm:$0xff]  }
 0x159   : > { %s1421_s28 = sshll.u32 %s675_s6, 3  ;;  %1015 = vmatprep.mubr.bf16.mxu1 %v1780_v4  ;;  %v1781_v23 = vld [vmem:[%s2158_s7 + $0x14] ss:$8 sps:$4 sm:$0xff]   ;;  %v1785_v25 = vld [vmem:[%s2158_s7 + $0x10] ss:$8 sps:$4 sm:$0xff]   ;;  %v695_v53 = vld [vmem:[#allocation3] sm:$0xff] }
 0x15a   : > { %s2237_s8 = scalar_lea.vmem [#allocation2], %s1421_s28  ;;  %v1783_v24 = vld [vmem:[%s2158_s7 + $0x94] ss:$8 sps:$4 sm:$0xff]   ;;  %v1786_v26 = vld [vmem:[%s2158_s7 + $0x90] ss:$8 sps:$4 sm:$0xff]   ;;  %v711_v55 = vld [vmem:[#allocation3 + $0x80] sm:$0xff] }
 0x15b   : > { %v687_v5 = vld [vmem:[%s2237_s8 + $0x40] sm:$0xff]  ;;  %v688_v7 = vld [vmem:[%s2237_s8 + $0x48] sm:$0xff]  ;;  %v689_v9 = vld [vmem:[%s2237_s8 + $0x50] sm:$0xff] }
 0x15c   : > { %v679_v6 = vld [vmem:[%s2237_s8] sm:$0xff]  ;;  %1481 = vmatprep.subr.bf16.mxu0 %v687_v5  ;;  %1633 = vmatprep.subr.bf16.mxu1 %v687_v5  ;;  %v680_v8 = vld [vmem:[%s2237_s8 + $0x8] sm:$0xff]  ;;  %v681_v10 = vld [vmem:[%s2237_s8 + $0x10] sm:$0xff] }
 0x15d   : > { %1482 = vmatpush3.bf16.msra.mxu0 %v679_v6  ;;  %1641 = vmatpush3.bf16.msra.mxu1 %v679_v6  ;;  %v690_v11 = vld [vmem:[%s2237_s8 + $0x58] sm:$0xff]  ;;  %v691_v13 = vld [vmem:[%s2237_s8 + $0x60] sm:$0xff]  ;;  %v692_v15 = vld [vmem:[%s2237_s8 + $0x68] sm:$0xff] }
 0x15e   : > { %1483 = vmatprep.subr.bf16.mxu0 %v688_v7  ;;  %1634 = vmatprep.subr.bf16.mxu1 %v688_v7  ;;  %v682_v12 = vld [vmem:[%s2237_s8 + $0x18] sm:$0xff]  ;;  %v683_v14 = vld [vmem:[%s2237_s8 + $0x20] sm:$0xff]  ;;  %v684_v16 = vld [vmem:[%s2237_s8 + $0x28] sm:$0xff] }
 0x15f   : > { %v693_v17 = vld [vmem:[%s2237_s8 + $0x70] sm:$0xff]  ;;  %v694_v19 = vld [vmem:[%s2237_s8 + $0x78] sm:$0xff]  ;;  %v1787_v27 = vld [vmem:[%s2158_s7 + $0x24] ss:$8 sps:$4 sm:$0xff]  }
 0x160   : > { %v685_v18 = vld [vmem:[%s2237_s8 + $0x30] sm:$0xff]  ;;  %v686_v20 = vld [vmem:[%s2237_s8 + $0x38] sm:$0xff]  ;;  %v1789_v28 = vld [vmem:[%s2158_s7 + $0xa4] ss:$8 sps:$4 sm:$0xff]  }
 0x161   : > { %1484 = vmatpush3.bf16.msra.mxu0 %v680_v8  ;;  %1642 = vmatpush3.bf16.msra.mxu1 %v680_v8  ;;  %v1791_v29 = vld [vmem:[%s2158_s7 + $0x20] ss:$8 sps:$4 sm:$0xff]   ;;  %v1793_v31 = vld [vmem:[%s2158_s7 + $0x34] ss:$8 sps:$4 sm:$0xff]   ;;  %v1797_v33 = vld [vmem:[%s2158_s7 + $0x30] ss:$8 sps:$4 sm:$0xff]  }
 0x162   : > { %1485 = vmatprep.subr.bf16.mxu0 %v689_v9  ;;  %1635 = vmatprep.subr.bf16.mxu1 %v689_v9  ;;  %v1792_v30 = vld [vmem:[%s2158_s7 + $0xa0] ss:$8 sps:$4 sm:$0xff]   ;;  %v1795_v32 = vld [vmem:[%s2158_s7 + $0xb4] ss:$8 sps:$4 sm:$0xff]   ;;  %v1798_v34 = vld [vmem:[%s2158_s7 + $0xb0] ss:$8 sps:$4 sm:$0xff]  }
 0x163   : > { %v1799_v35 = vld [vmem:[%s2158_s7 + $0x44] ss:$8 sps:$4 sm:$0xff]   ;;  %v1803_v37 = vld [vmem:[%s2158_s7 + $0x40] ss:$8 sps:$4 sm:$0xff]   ;;  %v1805_v39 = vld [vmem:[%s2158_s7 + $0x54] ss:$8 sps:$4 sm:$0xff]  }
 0x164   : > { %v1801_v36 = vld [vmem:[%s2158_s7 + $0xc4] ss:$8 sps:$4 sm:$0xff]   ;;  %v1804_v38 = vld [vmem:[%s2158_s7 + $0xc0] ss:$8 sps:$4 sm:$0xff]   ;;  %v1807_v40 = vld [vmem:[%s2158_s7 + $0xd4] ss:$8 sps:$4 sm:$0xff]  }
 0x165   : > { %1486 = vmatpush3.bf16.msra.mxu0 %v681_v10  ;;  %1643 = vmatpush3.bf16.msra.mxu1 %v681_v10  ;;  %v1809_v41 = vld [vmem:[%s2158_s7 + $0x50] ss:$8 sps:$4 sm:$0xff]   ;;  %v1811_v43 = vld [vmem:[%s2158_s7 + $0x64] ss:$8 sps:$4 sm:$0xff]   ;;  %v1815_v45 = vld [vmem:[%s2158_s7 + $0x60] ss:$8 sps:$4 sm:$0xff]  }
 0x166   : > { %1487 = vmatprep.subr.bf16.mxu0 %v690_v11  ;;  %1636 = vmatprep.subr.bf16.mxu1 %v690_v11  ;;  %v1810_v42 = vld [vmem:[%s2158_s7 + $0xd0] ss:$8 sps:$4 sm:$0xff]   ;;  %v1813_v44 = vld [vmem:[%s2158_s7 + $0xe4] ss:$8 sps:$4 sm:$0xff]   ;;  %v1816_v46 = vld [vmem:[%s2158_s7 + $0xe0] ss:$8 sps:$4 sm:$0xff]  }
 0x167   : > { %v1817_v47 = vld [vmem:[%s2158_s7 + $0x74] ss:$8 sps:$4 sm:$0xff]   ;;  %v1821_v49 = vld [vmem:[%s2158_s7 + $0x70] ss:$8 sps:$4 sm:$0xff]   ;;  %v696_v61 = vld [vmem:[#allocation3 + $0x8] sm:$0xff] }
 0x168   : > { %v1819_v48 = vld [vmem:[%s2158_s7 + $0xf4] ss:$8 sps:$4 sm:$0xff]   ;;  %v1822_v50 = vld [vmem:[%s2158_s7 + $0xf0] ss:$8 sps:$4 sm:$0xff]   ;;  %v712_v63 = vld [vmem:[#allocation3 + $0x88] sm:$0xff] }
 0x169   : > { %1488 = vmatpush3.bf16.msra.mxu0 %v682_v12  ;;  %1644 = vmatpush3.bf16.msra.mxu1 %v682_v12  ;;  %v697_v9 = vld [vmem:[#allocation3 + $0x10] sm:$0xff] }
 0x16a   : > { %1489 = vmatprep.subr.bf16.mxu0 %v691_v13  ;;  %1637 = vmatprep.subr.bf16.mxu1 %v691_v13  ;;  %v713_v11 = vld [vmem:[#allocation3 + $0x90] sm:$0xff] }
 0x16d   : > { %1490 = vmatpush3.bf16.msra.mxu0 %v683_v14  ;;  %1645 = vmatpush3.bf16.msra.mxu1 %v683_v14 }
 0x16e   : > { %1491 = vmatprep.subr.bf16.mxu0 %v692_v15  ;;  %1638 = vmatprep.subr.bf16.mxu1 %v692_v15 }
 0x171   : > { %1492 = vmatpush3.bf16.msra.mxu0 %v684_v16  ;;  %1646 = vmatpush3.bf16.msra.mxu1 %v684_v16 }
 0x172   : > { %1493 = vmatprep.subr.bf16.mxu0 %v693_v17  ;;  %1639 = vmatprep.subr.bf16.mxu1 %v693_v17  ;;  %v698_v17 = vld [vmem:[#allocation3 + $0x18] sm:$0xff] }
 0x175   : > { %1494 = vmatpush3.bf16.msra.mxu0 %v685_v18  ;;  %1647 = vmatpush3.bf16.msra.mxu1 %v685_v18 }
 0x176   : > { %1495 = vmatprep.subr.bf16.mxu0 %v694_v19  ;;  %1640 = vmatprep.subr.bf16.mxu1 %v694_v19  ;;  %v714_v19 = vld [vmem:[#allocation3 + $0x98] sm:$0xff] }
 0x179   : > { %1496 = vmatpush3.bf16.msra.mxu0 %v686_v20  ;;  %1648 = vmatpush3.bf16.msra.mxu1 %v686_v20 }
 0x17c   : > { %952 = vmatmul.mubr.bf16.vlgmr.msra.gmra.mrb[0].mxu0 %v1775_v21  ;;  %1016 = vmatmul.mubr.bf16.vlgmr.msra.gmra.mrb[0].mxu1 %v1778_v22 }
 0x17d   : > { %959 = vmatprep.mubr.bf16.mxu0 %v1781_v23  ;;  %1023 = vmatprep.mubr.bf16.mxu1 %v1783_v24 }
 0x184   : > { %960 = vmatmul.mubr.bf16.gmra.mrb[4].mxu0 %v1785_v25  ;;  %1024 = vmatmul.mubr.bf16.gmra.mrb[4].mxu1 %v1786_v26 }
 0x185   : > { %967 = vmatprep.mubr.bf16.mxu0 %v1787_v27  ;;  %1031 = vmatprep.mubr.bf16.mxu1 %v1789_v28 }
 0x18c   : > { %968 = vmatmul.mubr.bf16.gmra.mrb[8].mxu0 %v1791_v29  ;;  %1032 = vmatmul.mubr.bf16.gmra.mrb[8].mxu1 %v1792_v30  ;;  %v699_v29 = vld [vmem:[#allocation3 + $0x20] sm:$0xff] }
 0x18d   : > { %975 = vmatprep.mubr.bf16.mxu0 %v1793_v31  ;;  %1039 = vmatprep.mubr.bf16.mxu1 %v1795_v32  ;;  %v715_v31 = vld [vmem:[#allocation3 + $0xa0] sm:$0xff] }
 0x194   : > { %976 = vmatmul.mubr.bf16.gmra.mrb[12].mxu0 %v1797_v33  ;;  %1040 = vmatmul.mubr.bf16.gmra.mrb[12].mxu1 %v1798_v34 }
 0x195   : > { %983 = vmatprep.mubr.bf16.mxu0 %v1799_v35  ;;  %1047 = vmatprep.mubr.bf16.mxu1 %v1801_v36 }
 0x19c   : > { %984 = vmatmul.mubr.bf16.gmra.mrb[16].mxu0 %v1803_v37  ;;  %1048 = vmatmul.mubr.bf16.gmra.mrb[16].mxu1 %v1804_v38  ;;  %v700_v37 = vld [vmem:[#allocation3 + $0x28] sm:$0xff] }
 0x19d   : > { %991 = vmatprep.mubr.bf16.mxu0 %v1805_v39  ;;  %1055 = vmatprep.mubr.bf16.mxu1 %v1807_v40  ;;  %v716_v39 = vld [vmem:[#allocation3 + $0xa8] sm:$0xff] }
 0x1a4   : > { %992 = vmatmul.mubr.bf16.gmra.mrb[20].mxu0 %v1809_v41  ;;  %1056 = vmatmul.mubr.bf16.gmra.mrb[20].mxu1 %v1810_v42 }
 0x1a5   : > { %999 = vmatprep.mubr.bf16.mxu0 %v1811_v43  ;;  %1063 = vmatprep.mubr.bf16.mxu1 %v1813_v44 }
 0x1ac   : > { %1000 = vmatmul.mubr.bf16.gmra.mrb[24].mxu0 %v1815_v45  ;;  %1064 = vmatmul.mubr.bf16.gmra.mrb[24].mxu1 %v1816_v46 }
 0x1ad   : > { %1007 = vmatprep.mubr.bf16.mxu0 %v1817_v47  ;;  %1071 = vmatprep.mubr.bf16.mxu1 %v1819_v48 }
 0x1b4   : > { %1008 = vmatmul.mubr.bf16.gmra.mrb[28].mxu0 %v1821_v49  ;;  %1072 = vmatmul.mubr.bf16.gmra.mrb[28].mxu1 %v1822_v50  ;;  %v701_v49 = vld [vmem:[#allocation3 + $0x30] sm:$0xff] }
 0x24f   : > { %v1497_v51 = vpop.f32.mrb[0].mxu0  ;;  %v1545_v52 = vpop.f32.mrb[0].mxu1 }
 0x250   : > { %v1498_v54 = vpop.f32.mrb[1].mxu0  ;;  %v1546_v56 = vpop.f32.mrb[1].mxu1 }
 0x251   : > { %v1499_v57 = vadd.f32 %v1498_v54, %v1497_v51  ;;  %v1547_v58 = vadd.f32 %v1546_v56, %v1545_v52  ;;  %v1500_v59 = vpop.f32.mrb[2].mxu0  ;;  %v1548_v60 = vpop.f32.mrb[2].mxu1  ;;  %v717_v51 = vld [vmem:[#allocation3 + $0xb0] sm:$0xff] }
 0x252   : > { %v1501_v62 = vpop.f32.mrb[3].mxu0  ;;  %v1549_v0 = vpop.f32.mrb[3].mxu1 }
 0x253   : > { %v1080_v1 = vadd.f32 %v1499_v57, %v695_v53  ;;  %v1096_v2 = vadd.f32 %v1547_v58, %v711_v55  ;;  %v1502_v3 = vadd.f32 %v1501_v62, %v1500_v59  ;;  %v1550_v4 = vadd.f32 %v1549_v0, %v1548_v60  ;;  %v702_v57 = vld [vmem:[#allocation3 + $0x38] sm:$0xff] }
 0x254   : > { %v718_v59 = vld [vmem:[#allocation3 + $0xb8] sm:$0xff] }
 0x255   : > { %1112 = vst [vmem:[#allocation3] sm:$0xff] %v1080_v1  ;;  %1128 = vst [vmem:[#allocation3 + $0x80] sm:$0xff] %v1096_v2  ;;  %v1081_v5 = vadd.f32 %v1502_v3, %v696_v61  ;;  %v1097_v6 = vadd.f32 %v1550_v4, %v712_v63 }
 0x257   : > { %1113 = vst [vmem:[#allocation3 + $0x8] sm:$0xff] %v1081_v5  ;;  %1129 = vst [vmem:[#allocation3 + $0x88] sm:$0xff] %v1097_v6  ;;  %v1503_v7 = vpop.f32.mrb[4].mxu0  ;;  %v1551_v8 = vpop.f32.mrb[4].mxu1  ;;  %v703_v5 = vld [vmem:[#allocation3 + $0x40] sm:$0xff] }
 0x258   : > { %v1504_v10 = vpop.f32.mrb[5].mxu0  ;;  %v1552_v12 = vpop.f32.mrb[5].mxu1 }
 0x259   : > { %v1505_v13 = vadd.f32 %v1504_v10, %v1503_v7  ;;  %v1553_v14 = vadd.f32 %v1552_v12, %v1551_v8  ;;  %v1506_v15 = vpop.f32.mrb[6].mxu0  ;;  %v1554_v16 = vpop.f32.mrb[6].mxu1  ;;  %v719_v7 = vld [vmem:[#allocation3 + $0xc0] sm:$0xff] }
 0x25a   : > { %v1507_v18 = vpop.f32.mrb[7].mxu0  ;;  %v1555_v20 = vpop.f32.mrb[7].mxu1 }
 0x25b   : > { %v1082_v21 = vadd.f32 %v1505_v13, %v697_v9  ;;  %v1098_v22 = vadd.f32 %v1553_v14, %v713_v11  ;;  %v1508_v23 = vadd.f32 %v1507_v18, %v1506_v15  ;;  %v1556_v24 = vadd.f32 %v1555_v20, %v1554_v16  ;;  %v704_v13 = vld [vmem:[#allocation3 + $0x48] sm:$0xff] }
 0x25c   : > { %v720_v15 = vld [vmem:[#allocation3 + $0xc8] sm:$0xff] }
 0x25d   : > { %1114 = vst [vmem:[#allocation3 + $0x10] sm:$0xff] %v1082_v21  ;;  %1130 = vst [vmem:[#allocation3 + $0x90] sm:$0xff] %v1098_v22  ;;  %v1083_v25 = vadd.f32 %v1508_v23, %v698_v17  ;;  %v1099_v26 = vadd.f32 %v1556_v24, %v714_v19 }
 0x25f   : > { %1115 = vst [vmem:[#allocation3 + $0x18] sm:$0xff] %v1083_v25  ;;  %1131 = vst [vmem:[#allocation3 + $0x98] sm:$0xff] %v1099_v26  ;;  %v1509_v27 = vpop.f32.mrb[8].mxu0  ;;  %v1557_v28 = vpop.f32.mrb[8].mxu1  ;;  %v705_v25 = vld [vmem:[#allocation3 + $0x50] sm:$0xff] }
 0x260   : > { %v1510_v30 = vpop.f32.mrb[9].mxu0  ;;  %v1558_v32 = vpop.f32.mrb[9].mxu1 }
 0x261   : > { %v1511_v33 = vadd.f32 %v1510_v30, %v1509_v27  ;;  %v1559_v34 = vadd.f32 %v1558_v32, %v1557_v28  ;;  %v1512_v35 = vpop.f32.mrb[10].mxu0  ;;  %v1560_v36 = vpop.f32.mrb[10].mxu1  ;;  %v721_v27 = vld [vmem:[#allocation3 + $0xd0] sm:$0xff] }
 0x262   : > { %v1513_v38 = vpop.f32.mrb[11].mxu0  ;;  %v1561_v40 = vpop.f32.mrb[11].mxu1 }
 0x263   : > { %v1084_v41 = vadd.f32 %v1511_v33, %v699_v29  ;;  %v1100_v42 = vadd.f32 %v1559_v34, %v715_v31  ;;  %v1514_v43 = vadd.f32 %v1513_v38, %v1512_v35  ;;  %v1562_v44 = vadd.f32 %v1561_v40, %v1560_v36  ;;  %v706_v33 = vld [vmem:[#allocation3 + $0x58] sm:$0xff] }
 0x264   : > { %v722_v35 = vld [vmem:[#allocation3 + $0xd8] sm:$0xff] }
 0x265   : > { %1116 = vst [vmem:[#allocation3 + $0x20] sm:$0xff] %v1084_v41  ;;  %1132 = vst [vmem:[#allocation3 + $0xa0] sm:$0xff] %v1100_v42  ;;  %v1085_v45 = vadd.f32 %v1514_v43, %v700_v37  ;;  %v1101_v46 = vadd.f32 %v1562_v44, %v716_v39 }
 0x267   : > { %1117 = vst [vmem:[#allocation3 + $0x28] sm:$0xff] %v1085_v45  ;;  %1133 = vst [vmem:[#allocation3 + $0xa8] sm:$0xff] %v1101_v46  ;;  %v1515_v47 = vpop.f32.mrb[12].mxu0  ;;  %v1563_v48 = vpop.f32.mrb[12].mxu1  ;;  %v707_v45 = vld [vmem:[#allocation3 + $0x60] sm:$0xff] }
 0x268   : > { %v1516_v50 = vpop.f32.mrb[13].mxu0  ;;  %v1564_v52 = vpop.f32.mrb[13].mxu1 }
 0x269   : > { %v1517_v53 = vadd.f32 %v1516_v50, %v1515_v47  ;;  %v1565_v54 = vadd.f32 %v1564_v52, %v1563_v48  ;;  %v1518_v55 = vpop.f32.mrb[14].mxu0  ;;  %v1566_v56 = vpop.f32.mrb[14].mxu1  ;;  %v723_v47 = vld [vmem:[#allocation3 + $0xe0] sm:$0xff] }
 0x26a   : > { %v1519_v58 = vpop.f32.mrb[15].mxu0  ;;  %v1567_v60 = vpop.f32.mrb[15].mxu1 }
 0x26b   : > { %v1086_v61 = vadd.f32 %v1517_v53, %v701_v49  ;;  %v1102_v62 = vadd.f32 %v1565_v54, %v717_v51  ;;  %v1520_v63 = vadd.f32 %v1519_v58, %v1518_v55  ;;  %v1568_v0 = vadd.f32 %v1567_v60, %v1566_v56  ;;  %v708_v53 = vld [vmem:[#allocation3 + $0x68] sm:$0xff] }
 0x26c   : > { %v724_v55 = vld [vmem:[#allocation3 + $0xe8] sm:$0xff] }
 0x26d   : > { %1118 = vst [vmem:[#allocation3 + $0x30] sm:$0xff] %v1086_v61  ;;  %1134 = vst [vmem:[#allocation3 + $0xb0] sm:$0xff] %v1102_v62  ;;  %v1087_v1 = vadd.f32 %v1520_v63, %v702_v57  ;;  %v1103_v2 = vadd.f32 %v1568_v0, %v718_v59 }
 0x26f   : > { %1119 = vst [vmem:[#allocation3 + $0x38] sm:$0xff] %v1087_v1  ;;  %1135 = vst [vmem:[#allocation3 + $0xb8] sm:$0xff] %v1103_v2  ;;  %v1521_v3 = vpop.f32.mrb[16].mxu0  ;;  %v1569_v4 = vpop.f32.mrb[16].mxu1  ;;  %v709_v1 = vld [vmem:[#allocation3 + $0x70] sm:$0xff] }
 0x270   : > { %v1522_v6 = vpop.f32.mrb[17].mxu0  ;;  %v1570_v8 = vpop.f32.mrb[17].mxu1 }
 0x271   : > { %v1523_v9 = vadd.f32 %v1522_v6, %v1521_v3  ;;  %v1571_v10 = vadd.f32 %v1570_v8, %v1569_v4  ;;  %v1524_v11 = vpop.f32.mrb[18].mxu0  ;;  %v1572_v12 = vpop.f32.mrb[18].mxu1  ;;  %v725_v3 = vld [vmem:[#allocation3 + $0xf0] sm:$0xff] }
 0x272   : > { %v1525_v14 = vpop.f32.mrb[19].mxu0  ;;  %v1573_v16 = vpop.f32.mrb[19].mxu1 }
 0x273   : > { %v1088_v17 = vadd.f32 %v1523_v9, %v703_v5  ;;  %v1104_v18 = vadd.f32 %v1571_v10, %v719_v7  ;;  %v1526_v19 = vadd.f32 %v1525_v14, %v1524_v11  ;;  %v1574_v20 = vadd.f32 %v1573_v16, %v1572_v12  ;;  %v710_v9 = vld [vmem:[#allocation3 + $0x78] sm:$0xff] }
 0x274   : > { %v726_v11 = vld [vmem:[#allocation3 + $0xf8] sm:$0xff] }
 0x275   : > { %1120 = vst [vmem:[#allocation3 + $0x40] sm:$0xff] %v1088_v17  ;;  %1136 = vst [vmem:[#allocation3 + $0xc0] sm:$0xff] %v1104_v18  ;;  %v1089_v21 = vadd.f32 %v1526_v19, %v704_v13  ;;  %v1105_v22 = vadd.f32 %v1574_v20, %v720_v15  ;;  %v1148_v19 = vld [vmem:[#allocation3] sm:$0xff] (!%p1454_p4) }
 0x276   : > { %v2289_v20 = vld [vmem:[%s2430_s3] ss:$0 sm:$0xff] (!%p1454_p4) }
 0x277   : > { %1121 = vst [vmem:[#allocation3 + $0x48] sm:$0xff] %v1089_v21  ;;  %1137 = vst [vmem:[#allocation3 + $0xc8] sm:$0xff] %v1105_v22  ;;  %v1527_v23 = vpop.f32.mrb[20].mxu0  ;;  %v1575_v24 = vpop.f32.mrb[20].mxu1  ;;  %v1149_v21 = vld [vmem:[#allocation3 + $0x8] sm:$0xff] (!%p1454_p4)  ;;  %v1187_v22 = vadd.f32 (!%p1454_p4), %v2289_v20, %v1148_v19 }
 0x278   : > { %v1528_v26 = vpop.f32.mrb[21].mxu0  ;;  %v1576_v28 = vpop.f32.mrb[21].mxu1 }
 0x279   : > { %v1529_v29 = vadd.f32 %v1528_v26, %v1527_v23  ;;  %v1577_v30 = vadd.f32 %v1576_v28, %v1575_v24  ;;  %v1530_v31 = vpop.f32.mrb[22].mxu0  ;;  %v1578_v32 = vpop.f32.mrb[22].mxu1  ;;  %v1188_v23 = vadd.f32 (!%p1454_p4), %v2289_v20, %v1149_v21  ;;  %v1150_v24 = vld [vmem:[#allocation3 + $0x10] sm:$0xff] (!%p1454_p4)  ;;  %v1152_v26 = vld [vmem:[#allocation3 + $0x20] sm:$0xff] (!%p1454_p4)  ;;  %1219 = vst [vmem:[%s2173_s13] sm:$0xff] (!%p1454_p4), %v1187_v22 }
 0x27a   : > { %v1531_v34 = vpop.f32.mrb[23].mxu0  ;;  %v1579_v36 = vpop.f32.mrb[23].mxu1 }
 0x27b   : > { %v1090_v37 = vadd.f32 %v1529_v29, %v705_v25  ;;  %v1106_v38 = vadd.f32 %v1577_v30, %v721_v27  ;;  %v1532_v39 = vadd.f32 %v1531_v34, %v1530_v31  ;;  %v1580_v40 = vadd.f32 %v1579_v36, %v1578_v32  ;;  %v1151_v25 = vld [vmem:[#allocation3 + $0x18] sm:$0xff] (!%p1454_p4)  ;;  %v1153_v30 = vld [vmem:[#allocation3 + $0x28] sm:$0xff] (!%p1454_p4)  ;;  %v1154_v31 = vld [vmem:[#allocation3 + $0x30] sm:$0xff] (!%p1454_p4)  ;;  %1220 = vst [vmem:[%s2173_s13 + $0x8] sm:$0xff] (!%p1454_p4), %v1188_v23 }
 0x27c   : > { %v1189_v27 = vadd.f32 (!%p1454_p4), %v2289_v20, %v1150_v24  ;;  %v1190_v28 = vadd.f32 (!%p1454_p4), %v2289_v20, %v1151_v25  ;;  %v1191_v29 = vadd.f32 (!%p1454_p4), %v2289_v20, %v1152_v26  ;;  %v1155_v32 = vld [vmem:[#allocation3 + $0x38] sm:$0xff] (!%p1454_p4)  ;;  %v1193_v34 = vadd.f32 (!%p1454_p4), %v2289_v20, %v1154_v31  ;;  %v1156_v36 = vld [vmem:[#allocation3 + $0x40] sm:$0xff] (!%p1454_p4) }
 0x27d   : > { %1122 = vst [vmem:[#allocation3 + $0x50] sm:$0xff] %v1090_v37  ;;  %1138 = vst [vmem:[#allocation3 + $0xd0] sm:$0xff] %v1106_v38  ;;  %v1091_v41 = vadd.f32 %v1532_v39, %v706_v33  ;;  %v1107_v42 = vadd.f32 %v1580_v40, %v722_v35  ;;  %v1192_v33 = vadd.f32 (!%p1454_p4), %v2289_v20, %v1153_v30 }
 0x27e   : > { %v1194_v35 = vadd.f32 (!%p1454_p4), %v2289_v20, %v1155_v32  ;;  %v1157_v37 = vld [vmem:[#allocation3 + $0x48] sm:$0xff] (!%p1454_p4)  ;;  %1221 = vst [vmem:[%s2173_s13 + $0x10] sm:$0xff] (!%p1454_p4), %v1189_v27  ;;  %1222 = vst [vmem:[%s2173_s13 + $0x18] sm:$0xff] (!%p1454_p4), %v1190_v28  ;;  %v1195_v39 = vadd.f32 (!%p1454_p4), %v2289_v20, %v1156_v36 }
 0x27f   : > { %1123 = vst [vmem:[#allocation3 + $0x58] sm:$0xff] %v1091_v41  ;;  %1139 = vst [vmem:[#allocation3 + $0xd8] sm:$0xff] %v1107_v42  ;;  %v1533_v43 = vpop.f32.mrb[24].mxu0  ;;  %v1581_v44 = vpop.f32.mrb[24].mxu1  ;;  %v1196_v40 = vadd.f32 (!%p1454_p4), %v2289_v20, %v1157_v37 }
 0x280   : > { %v1534_v46 = vpop.f32.mrb[25].mxu0  ;;  %v1582_v48 = vpop.f32.mrb[25].mxu1  ;;  %1223 = vst [vmem:[%s2173_s13 + $0x20] sm:$0xff] (!%p1454_p4), %v1191_v29  ;;  %1224 = vst [vmem:[%s2173_s13 + $0x28] sm:$0xff] (!%p1454_p4), %v1192_v33 }
 0x281   : > { %v1535_v49 = vadd.f32 %v1534_v46, %v1533_v43  ;;  %v1583_v50 = vadd.f32 %v1582_v48, %v1581_v44  ;;  %v1536_v51 = vpop.f32.mrb[26].mxu0  ;;  %v1584_v52 = vpop.f32.mrb[26].mxu1  ;;  %1225 = vst [vmem:[%s2173_s13 + $0x30] sm:$0xff] (!%p1454_p4), %v1193_v34  ;;  %1226 = vst [vmem:[%s2173_s13 + $0x38] sm:$0xff] (!%p1454_p4), %v1194_v35 }
 0x282   : > { %v1537_v54 = vpop.f32.mrb[27].mxu0  ;;  %v1585_v56 = vpop.f32.mrb[27].mxu1  ;;  %1227 = vst [vmem:[%s2173_s13 + $0x40] sm:$0xff] (!%p1454_p4), %v1195_v39  ;;  %1228 = vst [vmem:[%s2173_s13 + $0x48] sm:$0xff] (!%p1454_p4), %v1196_v40 }
 0x283   : > { %v1092_v57 = vadd.f32 %v1535_v49, %v707_v45  ;;  %v1108_v58 = vadd.f32 %v1583_v50, %v723_v47  ;;  %v1538_v59 = vadd.f32 %v1537_v54, %v1536_v51  ;;  %v1586_v60 = vadd.f32 %v1585_v56, %v1584_v52  ;;  %v1164_v50 = vld [vmem:[#allocation3 + $0x80] sm:$0xff] (!%p1454_p4)  ;;  %v1165_v54 = vld [vmem:[#allocation3 + $0x88] sm:$0xff] (!%p1454_p4)  ;;  %v1167_v56 = vld [vmem:[#allocation3 + $0x98] sm:$0xff] (!%p1454_p4) }
 0x284   : > { %v1158_v38 = vld [vmem:[#allocation3 + $0x50] sm:$0xff] (!%p1454_p4) }
 0x285   : > { %1124 = vst [vmem:[#allocation3 + $0x60] sm:$0xff] %v1092_v57  ;;  %1140 = vst [vmem:[#allocation3 + $0xe0] sm:$0xff] %v1108_v58  ;;  %v1093_v61 = vadd.f32 %v1538_v59, %v708_v53  ;;  %v1109_v62 = vadd.f32 %v1586_v60, %v724_v55  ;;  %v1197_v41 = vadd.f32 (!%p1454_p4), %v2289_v20, %v1158_v38  ;;  %v1166_v55 = vld [vmem:[#allocation3 + $0x90] sm:$0xff] (!%p1454_p4)  ;;  %v1168_v60 = vld [vmem:[#allocation3 + $0xa0] sm:$0xff] (!%p1454_p4) }
 0x286   : > { %v1159_v42 = vld [vmem:[#allocation3 + $0x58] sm:$0xff] (!%p1454_p4)  ;;  %v1203_v53 = vadd.f32 (!%p1454_p4), %v2289_v20, %v1164_v50  ;;  %v1204_v57 = vadd.f32 (!%p1454_p4), %v2289_v20, %v1165_v54  ;;  %v1205_v58 = vadd.f32 (!%p1454_p4), %v2289_v20, %v1166_v55  ;;  %v1206_v59 = vadd.f32 (!%p1454_p4), %v2289_v20, %v1167_v56 }
 0x287   : > { %1125 = vst [vmem:[#allocation3 + $0x68] sm:$0xff] %v1093_v61  ;;  %1141 = vst [vmem:[#allocation3 + $0xe8] sm:$0xff] %v1109_v62  ;;  %v1539_v63 = vpop.f32.mrb[28].mxu0  ;;  %v1587_v0 = vpop.f32.mrb[28].mxu1  ;;  %v1198_v45 = vadd.f32 (!%p1454_p4), %v2289_v20, %v1159_v42  ;;  %v1169_v61 = vld [vmem:[#allocation3 + $0xa8] sm:$0xff] (!%p1454_p4)  ;;  %v1170_v62 = vld [vmem:[#allocation3 + $0xb0] sm:$0xff] (!%p1454_p4) }
 0x288   : > { %v1540_v2 = vpop.f32.mrb[29].mxu0  ;;  %v1588_v4 = vpop.f32.mrb[29].mxu1  ;;  %1229 = vst [vmem:[%s2173_s13 + $0x50] sm:$0xff] (!%p1454_p4), %v1197_v41  ;;  %1235 = vst [vmem:[%s2173_s13 + $0x80] sm:$0xff] (!%p1454_p4), %v1203_v53 }
 0x289   : > { %v1541_v5 = vadd.f32 %v1540_v2, %v1539_v63  ;;  %v1589_v6 = vadd.f32 %v1588_v4, %v1587_v0  ;;  %v1542_v7 = vpop.f32.mrb[30].mxu0  ;;  %v1590_v8 = vpop.f32.mrb[30].mxu1  ;;  %1147 = sbr.rel (%p1454_p4) target bundleno = 667 (0x29b), region = 52  ;;  %1230 = vst [vmem:[%s2173_s13 + $0x58] sm:$0xff] (!%p1454_p4), %v1198_v45  ;;  %v1207_v63 = vadd.f32 (!%p1454_p4), %v2289_v20, %v1168_v60  ;;  %v1208_v0 = vadd.f32 (!%p1454_p4), %v2289_v20, %v1169_v61  ;;  %v1171_v2 = vld [vmem:[#allocation3 + $0xb8] sm:$0xff] (!%p1454_p4)  ;;  %v1173_v4 = vld [vmem:[#allocation3 + $0xc8] sm:$0xff] (!%p1454_p4) }
 0x28a   : > { %v1543_v10 = vpop.f32.mrb[31].mxu0  ;;  %v1591_v12 = vpop.f32.mrb[31].mxu1  ;;  %1236 = vst [vmem:[%s2173_s13 + $0x88] sm:$0xff] (!%p1454_p4), %v1204_v57  ;;  %1237 = vst [vmem:[%s2173_s13 + $0x90] sm:$0xff] (!%p1454_p4), %v1205_v58 }
 0x28b   : > { %v1094_v13 = vadd.f32 %v1541_v5, %v709_v1  ;;  %v1110_v14 = vadd.f32 %v1589_v6, %v725_v3  ;;  %v1544_v15 = vadd.f32 %v1543_v10, %v1542_v7  ;;  %v1592_v16 = vadd.f32 %v1591_v12, %v1590_v8  ;;  %v1172_v3 = vld [vmem:[#allocation3 + $0xc0] sm:$0xff] (!%p1454_p4)  ;;  %1238 = vst [vmem:[%s2173_s13 + $0x98] sm:$0xff] (!%p1454_p4), %v1206_v59  ;;  %v1174_v8 = vld [vmem:[#allocation3 + $0xd0] sm:$0xff] (!%p1454_p4) }
 0x28c   : > { %v1160_v43 = vld [vmem:[#allocation3 + $0x60] sm:$0xff] (!%p1454_p4)  ;;  %v1209_v1 = vadd.f32 (!%p1454_p4), %v2289_v20, %v1170_v62  ;;  %v1210_v5 = vadd.f32 (!%p1454_p4), %v2289_v20, %v1171_v2  ;;  %v1211_v6 = vadd.f32 (!%p1454_p4), %v2289_v20, %v1172_v3  ;;  %v1212_v7 = vadd.f32 (!%p1454_p4), %v2289_v20, %v1173_v4  ;;  %1239 = vst [vmem:[%s2173_s13 + $0xa0] sm:$0xff] (!%p1454_p4), %v1207_v63 }
 0x28d   : > { %1126 = vst [vmem:[#allocation3 + $0x70] sm:$0xff] %v1094_v13  ;;  %1142 = vst [vmem:[#allocation3 + $0xf0] sm:$0xff] %v1110_v14  ;;  %v1095_v17 = vadd.f32 %v1544_v15, %v710_v9  ;;  %v1111_v18 = vadd.f32 %v1592_v16, %v726_v11  ;;  %v1199_v46 = vadd.f32 (!%p1454_p4), %v2289_v20, %v1160_v43  ;;  %v1175_v9 = vld [vmem:[#allocation3 + $0xd8] sm:$0xff] (!%p1454_p4)  ;;  %v1176_v10 = vld [vmem:[#allocation3 + $0xe0] sm:$0xff] (!%p1454_p4) }
 0x28e   : > { %v1161_v44 = vld [vmem:[#allocation3 + $0x68] sm:$0xff] (!%p1454_p4)  ;;  %1240 = vst [vmem:[%s2173_s13 + $0xa8] sm:$0xff] (!%p1454_p4), %v1208_v0  ;;  %1241 = vst [vmem:[%s2173_s13 + $0xb0] sm:$0xff] (!%p1454_p4), %v1209_v1  ;;  %v1213_v11 = vadd.f32 (!%p1454_p4), %v2289_v20, %v1174_v8  ;;  %v1214_v12 = vadd.f32 (!%p1454_p4), %v2289_v20, %v1175_v9  ;;  %v1215_v13 = vadd.f32 (!%p1454_p4), %v2289_v20, %v1176_v10 }
 0x28f   : > { %1127 = vst [vmem:[#allocation3 + $0x78] sm:$0xff] %v1095_v17  ;;  %1143 = vst [vmem:[#allocation3 + $0xf8] sm:$0xff] %v1111_v18  ;;  %v1200_v47 = vadd.f32 (!%p1454_p4), %v2289_v20, %v1161_v44  ;;  %v1177_v14 = vld [vmem:[#allocation3 + $0xe8] sm:$0xff] (!%p1454_p4) }
 0x290   : > { %1231 = vst [vmem:[%s2173_s13 + $0x60] sm:$0xff] %v1199_v46  ;;  %1242 = vst [vmem:[%s2173_s13 + $0xb8] sm:$0xff] %v1210_v5  ;;  %v1216_v17 = vadd.f32 %v2289_v20, %v1177_v14 }
 0x291   : > { %1232 = vst [vmem:[%s2173_s13 + $0x68] sm:$0xff] %v1200_v47  ;;  %1243 = vst [vmem:[%s2173_s13 + $0xc0] sm:$0xff] %v1211_v6 }
 0x292   : > { %1244 = vst [vmem:[%s2173_s13 + $0xc8] sm:$0xff] %v1212_v7  ;;  %1245 = vst [vmem:[%s2173_s13 + $0xd0] sm:$0xff] %v1213_v11 }
 0x293   : > { %1246 = vst [vmem:[%s2173_s13 + $0xd8] sm:$0xff] %v1214_v12  ;;  %1247 = vst [vmem:[%s2173_s13 + $0xe0] sm:$0xff] %v1215_v13 }
 0x294   : > { %v1162_v48 = vld [vmem:[#allocation3 + $0x70] sm:$0xff]  ;;  %1248 = vst [vmem:[%s2173_s13 + $0xe8] sm:$0xff] %v1216_v17 }
 0x295   : > { %v1201_v51 = vadd.f32 %v2289_v20, %v1162_v48  ;;  %v1178_v15 = vld [vmem:[#allocation3 + $0xf0] sm:$0xff] }
 0x296   : > { %v1163_v49 = vld [vmem:[#allocation3 + $0x78] sm:$0xff]  ;;  %v1217_v18 = vadd.f32 %v2289_v20, %v1178_v15 }
 0x297   : > { %v1202_v52 = vadd.f32 %v2289_v20, %v1163_v49  ;;  %1233 = vst [vmem:[%s2173_s13 + $0x70] sm:$0xff] %v1201_v51  ;;  %v1179_v16 = vld [vmem:[#allocation3 + $0xf8] sm:$0xff] }
 0x298   : > { %v1218_v19 = vadd.f32 %v2289_v20, %v1179_v16  ;;  %1249 = vst [vmem:[%s2173_s13 + $0xf0] sm:$0xff] %v1217_v18 }
 0x299   : > { %1234 = vst [vmem:[%s2173_s13 + $0x78] sm:$0xff] %v1202_v52 }
 0x29a   : > { %1250 = vst [vmem:[%s2173_s13 + $0xf8] sm:$0xff] %v1218_v19 }
 0x29b PF: > { %s1462_s21 = sshll.u32 %s1963_s22, 12  ;;  %s1265_s29 = sshll.u32 %s2173_s13, 4  ;;  %s2362_s29 = int_to_ptr.vmem [resolvable:$true] %s1265_s29 }
 0x29c   : > { %s2359_s18 = scalar_lea.hbm %s2431_s4, %s1462_s21  ;;  %s2366_s30 = scalar_lea.sflag [#allocation6], %s246_s20 }
 0x29d   : > { %s1853_s26 = scalar_lea.vmem %s2362_s29, 4096  ;;  %p2446_p1 = scmp.ne.s32.totalorder %s2441_s11, 0 }
 0x29e   : > { %p1854_p0 = scmp.ne.s32.totalorder %s2362_s29, %s1853_s26  ;;  %s1982_s22 = smov [#allocation7]  }
 0x29f   : > { %s1857_s27 = sshll.u32 %s1982_s22, 4  ;;  %s1858_s27 = int_to_ptr.vmem [resolvable:$false] %s1857_s27 }
 0x2a0   : > { %p1855_p6 = pnand %p1854_p0, %p2446_p1  ;;  %s1859_s6 = scalar_lea.vmem %s1858_s27, 8192 }
 0x2a1   : > { %p1860_p10 = scmp.lt.s32.totalorder %s2362_s29, %s1858_s27  ;;  %p1861_p11 = scmp.lt.s32.totalorder %s1859_s6, %s1853_s26 }
 0x2a2   : > { %p1856_p8 = pneg %p1855_p6 }
 0x2a3   : > { %p1862_p13 = por %p1861_p11, %p1860_p10 }
 0x2a5   : > { %p1863_p5 = pnand %p1862_p13, %p1856_p8 }
 0x2a7   : > { %1866 = shalt.err (!%p1863_p5)
}
 0x2a8   : > { %s1867_s20 = scalar_lea.hbm %s2359_s18, 4096  ;;  %s1871_s8 = scalar_lea.hbm %s2431_s4, 8192 }
 0x2a9   : > { %p1868_p3 = scmp.ne.s32.totalorder %s2359_s18, %s1867_s20  ;;  %p1872_p2 = scmp.lt.u32.totalorder %s2359_s18, %s2431_s4 }
 0x2aa   : > { %p1873_p7 = scmp.lt.u32.totalorder %s1871_s8, %s1867_s20  ;;  %p1875_p0 = scmp.lt.u32.totalorder %s1867_s20, %s2359_s18 }
 0x2ab   : > { %p1869_p9 = pnand %p1868_p3, %p2446_p1 }
 0x2ac   : > { %p1874_p4 = por %p1873_p7, %p1872_p2 }
 0x2ad   : > { %p1870_p12 = pneg %p1869_p9 }
 0x2ae   : > { %p1876_p6 = por %p1875_p0, %p1874_p4 }
 0x2b0   : > { %p1877_p8 = pnand %p1876_p6, %p1870_p12 }
 0x2b2   : > { %1880 = shalt.err (!%p1877_p8)
}
 0x2b3   : > { %s1983_s21 = smov 128   ;;  %s1984_s9 = smov 8  }
 0x2b4   : > { %1651 = dma.vmem_to_hbm [thread:$0]  (%p2446_p1), %s2362_s29, 4096, %s2359_s18, %s2366_s30, %s1983_s21, %s1983_s21, %s1984_s9  }
 0x2b5 PF: > { %p1662_p10 = scmp.ge.s32.totalorder %s1975_s25, 2  ;;  %s1280_s10 = sand.u32 1, %s1935_s15  }
 0x2b6   : > { %p2447_p11 = scmp.ne.s32.totalorder %s2443_s14, 0  ;;  %s1281_s26 = scalar_lea.sflag [#allocation6], %s1280_s10 }
 0x2b8   : > { %p1658_p13 = pnand %p1662_p10, %p2447_p11 }
 0x2ba   : > { %1930 = dma.done.wait (!%p1658_p13), %s1281_s26, 4096  }
 0x2bb   : > { %1932 = vsyncadd (!%p1658_p13), %s1281_s26, 4294963200  ;;  %s20_s25 = sadd.s32 1, %s1975_s25   ;;  %s2448_s11 = sld [smem:[#allocation10_spill]] }
 0x2bc   : > { %p17_p5 = scmp.ge.s32.totalorder %s20_s25, 6   ;;  %s2449_s20 = sld [smem:[#allocation13_spill]] }
 0x2bd   : > { %s2450_s29 = sld [smem:[#allocation11_spill]]  ;;  %s2451_s30 = sld [smem:[#allocation12_spill]] }
 0x2be   : > { %s2452_s15 = smov %s1939_s16  ;;  %s2453_s16 = smov %s1943_s17 }
 0x2bf   : > { %s2454_s17 = smov %s2097_s12  ;;  %s2455_s18 = smov %s1951_s19 }
 0x2c0   : > { %s2457_s21 = smov %s1967_s23  ;;  %s2458_s22 = smov %s1971_s24 }
 0x2c1   : > { %s2456_s19 = smov %s2448_s11  ;;  %19 = sbr.rel (!%p17_p5) target bundleno = 9 (0x9), region = 98 }
 0x2c3   : > { %s2459_s23 = smov %s2450_s29  ;;  %s2460_s24 = smov %s2451_s30 }
 0x2c8   :  { %1286 = vsyncpa [#allocation5], 1 }
 0x2c9   :  { %1288 = vsyncpa [#allocation5 + $0x1], 1 }
 0x2ca   :  { %1289 = vsyncpa [#allocation6], 1 }
 0x2cb   :  { %1291 = vsyncpa [#allocation6 + $0x1], 1 }

</bundles_post_ra>
